<compile_context>
chip_gen: v7x
topology: tpu7x:2x2x1
jax: 0.10.0
libtpu: 0.0.40
codegen_flags: <defaults>
</compile_context>

<pallas_src>
import jax
import jax.numpy as jnp
from jax.experimental import pallas as pl
from jax.experimental.pallas import tpu as pltpu

D_IN = 320     # fc1 input features
H = 50         # fc1 output features (real)
H_PAD = 128    # fc1 output features padded to a full lane register
D_OUT = 10     # fc2 output features

_NEG = -1e30   # finite "minus infinity": padded fc1 lanes exit fc1 at ~-1e30,
               # fall out of softmax stats, and contribute exactly 0 to fc2
               # (-1e30 * 0 = 0), so no in-kernel masking is required.


def _net_kernel(x_ref, w1_ref, b1_ref, w2_ref, b2_ref, o_ref):
    # x streamed as f32; cast to bf16 in-kernel (VPU cast hides under the DMA).
    x = x_ref[...].astype(jnp.bfloat16)

    # fc1: [tb,320]bf16 @ [320,128]bf16 -> f32 accumulation, + f32 bias.
    # Padded lanes get bias = -1e30, so no iota/compare/select is needed.
    h = jnp.dot(x, w1_ref[...], preferred_element_type=jnp.float32) + b1_ref[...]
    # log_softmax over dim=1 (numerically stable, f32 throughout).
    h = h - jnp.max(h, axis=1, keepdims=True)
    h = h - jnp.log(jnp.sum(jnp.exp(h), axis=1, keepdims=True))

    # fc2: [tb,128]f32 @ [128,10]f32 -> f32 (tiny; padded rows of w2 are zero,
    # so the ~-1e30 padded lanes of h contribute exactly 0).
    y = jnp.dot(h, w2_ref[...], preferred_element_type=jnp.float32) + b2_ref[...]
    # log_softmax over dim=1.
    y = y - jnp.max(y, axis=1, keepdims=True)
    y = y - jnp.log(jnp.sum(jnp.exp(y), axis=1, keepdims=True))

    o_ref[...] = y.astype(o_ref.dtype)


def _tile_and_vmem_defaults():
    """Generation-aware batch tile / scoped-VMEM budget.

    128 MiB VMEM parts (v5e/v6e): 16K-row tiles, 96 MiB scoped limit.
    64 MiB VMEM parts (v7x):       8K-row tiles, 48 MiB scoped limit
    (footprint ~33 MiB incl. double-buffered f32 x and f32 temps).
    """
    try:
        vmem_cap = pltpu.get_tpu_info().vmem_capacity_bytes
    except Exception:
        vmem_cap = 64 * 1024 * 1024  # conservative fallback (v7x-sized)
    if vmem_cap >= 100 * 1024 * 1024:
        return 16384, 96 * 1024 * 1024
    return 8192, 48 * 1024 * 1024


def net_forward(x, w1_pad_bf16, b1_pad, w2_pad, b2, *, block_b=None,
                core_parallel=False):
    """x: [B,320] f32; w1_pad_bf16: [320,128] bf16; b1_pad: [1,128] f32
    (padded lanes = -1e30); w2_pad: [128,10] f32 (padded rows = 0); b2: [1,10] f32.
    """
    B = x.shape[0]
    default_tb, vmem_limit = _tile_and_vmem_defaults()
    tb = default_tb if block_b is None else block_b
    if B <= tb:
        tb = B  # one block covering the full batch dim (always legal)
    else:
        tb = max(16, (tb // 16) * 16)  # full bf16 sublane pairs; never fall back to B
    grid = (pl.cdiv(B, tb),)

    # Plain "parallel" is portable; on v7x flip core_parallel=True to shard the
    # batch grid across the two TensorCores if a profile shows a single TC busy.
    batch_sem = pltpu.CORE_PARALLEL if core_parallel else "parallel"

    return pl.pallas_call(
        _net_kernel,
        out_shape=jax.ShapeDtypeStruct((B, D_OUT), jnp.float32),
        grid=grid,
        in_specs=[
            pl.BlockSpec((tb, D_IN), lambda i: (i, 0)),       # x: streamed per batch tile (f32)
            pl.BlockSpec((D_IN, H_PAD), lambda i: (0, 0)),    # w1: resident (bf16, DMA'd once)
            pl.BlockSpec((1, H_PAD), lambda i: (0, 0)),       # b1: resident
            pl.BlockSpec((H_PAD, D_OUT), lambda i: (0, 0)),   # w2: resident
            pl.BlockSpec((1, D_OUT), lambda i: (0, 0)),       # b2: resident
        ],
        out_specs=pl.BlockSpec((tb, D_OUT), lambda i: (i, 0)),
        compiler_params=pltpu.CompilerParams(
            dimension_semantics=(batch_sem,),
            vmem_limit_bytes=vmem_limit,
        ),
    )(x, w1_pad_bf16, b1_pad, w2_pad, b2)


class Net:
    """JAX/Pallas port of the PyTorch Net module."""

    def __init__(self, key):
        k1, k2, k3, k4 = jax.random.split(key, 4)
        # Match PyTorch nn.Linear default init: U(-1/sqrt(fan_in), 1/sqrt(fan_in)).
        bound1 = 1.0 / (D_IN ** 0.5)
        bound2 = 1.0 / (H ** 0.5)
        w1 = jax.random.uniform(k1, (D_IN, H), jnp.float32, -bound1, bound1)
        b1 = jax.random.uniform(k2, (1, H), jnp.float32, -bound1, bound1)
        w2 = jax.random.uniform(k3, (H, D_OUT), jnp.float32, -bound2, bound2)
        b2 = jax.random.uniform(k4, (1, D_OUT), jnp.float32, -bound2, bound2)
        # Lane-pad fc1 to 128 outputs: zero w1 columns, bias pad = -1e30 (so the
        # kernel needs no masking), zero w2 rows for the padded inputs.
        # w1 is pre-cast to bf16 once here (resident weight, no per-call convert).
        self.w1 = (jnp.zeros((D_IN, H_PAD), jnp.float32)
                   .at[:, :H].set(w1).astype(jnp.bfloat16))
        self.b1 = jnp.full((1, H_PAD), _NEG, jnp.float32).at[:, :H].set(b1)
        self.w2 = jnp.zeros((H_PAD, D_OUT), jnp.float32).at[:H, :].set(w2)
        self.b2 = b2
        # Non-trainable bool flag from the ParameterList (toggled as a side effect).
        self.flag = jnp.zeros((1,), dtype=jnp.bool_)

    def forward(self, x):
        out = net_forward(x, self.w1, self.b1, self.w2, self.b2)
        # Side effect from the original forward: flip the bool param.
        # TODO(synk): original module also prints the flag and x.shape; prints
        # suppressed here to keep stdout clean for the harness.
        self.flag = jnp.logical_not(self.flag)
        return out


def _ref_forward(x, w1, b1, w2, b2):
    """Pure-JAX reference using the same bf16 fc1 inputs as the kernel."""
    h = jnp.dot(x.astype(jnp.bfloat16), w1.astype(jnp.bfloat16),
                preferred_element_type=jnp.float32) + b1
    h = jax.nn.log_softmax(h, axis=1)
    y = jnp.dot(h, w2, preferred_element_type=jnp.float32) + b2
    return jax.nn.log_softmax(y, axis=1)


if __name__ == "__main__":
    key = jax.random.PRNGKey(0)
    pkey, xkey = jax.random.split(key)

    net = Net(pkey)
    B = 8  # small demo batch; tiling above targets large B where it matters
    x = jax.random.normal(xkey, (B, D_IN), dtype=jnp.float32)

    y = net.forward(x)
    y = jax.block_until_ready(y)
    assert y.shape == (B, D_OUT)

    # Sanity 1: log_softmax rows must exp-sum to 1 (final softmax is exact f32).
    row_sums = jnp.sum(jnp.exp(y), axis=1)
    assert bool(jnp.all(jnp.abs(row_sums - 1.0) < 1e-4))

    # Sanity 2: match pure-JAX reference built from the un-padded parameters.
    y_ref = _ref_forward(x, net.w1[:, :H], net.b1[:, :H], net.w2[:H, :], net.b2)
    assert bool(jnp.all(jnp.abs(y - y_ref) < 2e-2))

    print("KERNEL_OK")
</pallas_src>

<mosaic_0001>
module attributes {stable_mosaic.version = 11 : i64} {
  func.func @_net_kernel(%arg0: i32, %arg1: memref<8x320xf32, #tpu.memory_space<vmem>>, %arg2: memref<320x128xbf16, #tpu.memory_space<vmem>>, %arg3: memref<1x128xf32, #tpu.memory_space<vmem>>, %arg4: memref<128x10xf32, #tpu.memory_space<vmem>>, %arg5: memref<1x10xf32, #tpu.memory_space<vmem>>, %arg6: memref<8x10xf32, #tpu.memory_space<vmem>>) attributes {dimension_semantics = [#tpu.dimension_semantics<parallel>], iteration_bounds = array<i64: 1>, scalar_prefetch = 0 : i64, scratch_operands = 0 : i64, tpu.core_type = #tpu.core_type<tc>, window_params = [{transform_indices = @transform_0, window_bounds = array<i64: 8, 320>}, {pipeline_mode = #tpu.pipeline_mode<synchronous>, transform_indices = @transform_1, window_bounds = array<i64: 320, 128>}, {pipeline_mode = #tpu.pipeline_mode<synchronous>, transform_indices = @transform_2, window_bounds = array<i64: 1, 128>}, {pipeline_mode = #tpu.pipeline_mode<synchronous>, transform_indices = @transform_3, window_bounds = array<i64: 128, 10>}, {pipeline_mode = #tpu.pipeline_mode<synchronous>, transform_indices = @transform_4, window_bounds = array<i64: 1, 10>}, {transform_indices = @transform_5, window_bounds = array<i64: 8, 10>}]} {
    %c0 = arith.constant 0 : index
    %c0_0 = arith.constant 0 : index
    %0 = vector.load %arg1[%c0, %c0_0] : memref<8x320xf32, #tpu.memory_space<vmem>>, vector<8x320xf32>
    %1 = arith.truncf %0 : vector<8x320xf32> to vector<8x320xbf16>
    %c0_1 = arith.constant 0 : index
    %c0_2 = arith.constant 0 : index
    %2 = vector.load %arg2[%c0_1, %c0_2] : memref<320x128xbf16, #tpu.memory_space<vmem>>, vector<320x128xbf16>
    %cst = arith.constant dense<0.000000e+00> : vector<8x128xf32>
    %3 = tpu.matmul %1, %2, %cst {dimension_numbers = #tpu.dot_dimension_numbers<[1], [0], [0], [1], [0, 0, 1, 1], [], []>} : vector<8x320xbf16>, vector<320x128xbf16>, vector<8x128xf32> -> vector<8x128xf32>
    %c0_3 = arith.constant 0 : index
    %c0_4 = arith.constant 0 : index
    %4 = vector.load %arg3[%c0_3, %c0_4] : memref<1x128xf32, #tpu.memory_space<vmem>>, vector<1x128xf32>
    %5 = vector.broadcast %4 : vector<1x128xf32> to vector<8x128xf32>
    %6 = arith.addf %3, %5 : vector<8x128xf32>
    %cst_5 = arith.constant dense<0xFF800000> : vector<8xf32>
    %7 = vector.multi_reduction <maximumf>, %6, %cst_5 [1] : vector<8x128xf32> to vector<8xf32>
    %8 = vector.shape_cast %7 : vector<8xf32> to vector<8x1xf32>
    %9 = vector.broadcast %8 : vector<8x1xf32> to vector<8x128xf32>
    %10 = arith.subf %6, %9 : vector<8x128xf32>
    %11 = math.exp %10 : vector<8x128xf32>
    %cst_6 = arith.constant dense<0.000000e+00> : vector<8xf32>
    %12 = vector.multi_reduction <add>, %11, %cst_6 [1] : vector<8x128xf32> to vector<8xf32>
    %13 = vector.shape_cast %12 : vector<8xf32> to vector<8x1xf32>
    %14 = math.log %13 : vector<8x1xf32>
    %15 = vector.broadcast %14 : vector<8x1xf32> to vector<8x128xf32>
    %16 = arith.subf %10, %15 : vector<8x128xf32>
    %c0_7 = arith.constant 0 : index
    %c0_8 = arith.constant 0 : index
    %17 = vector.load %arg4[%c0_7, %c0_8] : memref<128x10xf32, #tpu.memory_space<vmem>>, vector<128x10xf32>
    %cst_9 = arith.constant dense<0.000000e+00> : vector<8x10xf32>
    %18 = tpu.matmul %16, %17, %cst_9 {dimension_numbers = #tpu.dot_dimension_numbers<[1], [0], [0], [1], [0, 0, 1, 1], [], []>} : vector<8x128xf32>, vector<128x10xf32>, vector<8x10xf32> -> vector<8x10xf32>
    %c0_10 = arith.constant 0 : index
    %c0_11 = arith.constant 0 : index
    %19 = vector.load %arg5[%c0_10, %c0_11] : memref<1x10xf32, #tpu.memory_space<vmem>>, vector<1x10xf32>
    %20 = vector.broadcast %19 : vector<1x10xf32> to vector<8x10xf32>
    %21 = arith.addf %18, %20 : vector<8x10xf32>
    %cst_12 = arith.constant dense<0xFF800000> : vector<8xf32>
    %22 = vector.multi_reduction <maximumf>, %21, %cst_12 [1] : vector<8x10xf32> to vector<8xf32>
    %23 = vector.shape_cast %22 : vector<8xf32> to vector<8x1xf32>
    %24 = vector.broadcast %23 : vector<8x1xf32> to vector<8x10xf32>
    %25 = arith.subf %21, %24 : vector<8x10xf32>
    %26 = math.exp %25 : vector<8x10xf32>
    %cst_13 = arith.constant dense<0.000000e+00> : vector<8xf32>
    %27 = vector.multi_reduction <add>, %26, %cst_13 [1] : vector<8x10xf32> to vector<8xf32>
    %28 = vector.shape_cast %27 : vector<8xf32> to vector<8x1xf32>
    %29 = math.log %28 : vector<8x1xf32>
    %30 = vector.broadcast %29 : vector<8x1xf32> to vector<8x10xf32>
    %31 = arith.subf %25, %30 : vector<8x10xf32>
    %c0_14 = arith.constant 0 : index
    %c0_15 = arith.constant 0 : index
    %32 = vector.load %arg6[%c0_14, %c0_15] : memref<8x10xf32, #tpu.memory_space<vmem>>, vector<8x10xf32>
    tpu.vector_store %arg6[%c0_14, %c0_15], %31 {strides = array<i32>} : memref<8x10xf32, #tpu.memory_space<vmem>>, vector<8x10xf32>,
    return
  }
  func.func @transform_0(%arg0: i32) -> (i32, i32) {
    %c0_i32 = arith.constant 0 : i32
    %c0_i32_0 = arith.constant 0 : i32
    return %arg0, %c0_i32 : i32, i32
  }
  func.func @transform_1(%arg0: i32) -> (i32, i32) {
    %c0_i32 = arith.constant 0 : i32
    %c0_i32_0 = arith.constant 0 : i32
    %c0_i32_1 = arith.constant 0 : i32
    return %c0_i32, %c0_i32_0 : i32, i32
  }
  func.func @transform_2(%arg0: i32) -> (i32, i32) {
    %c0_i32 = arith.constant 0 : i32
    %c0_i32_0 = arith.constant 0 : i32
    %c0_i32_1 = arith.constant 0 : i32
    return %c0_i32, %c0_i32_0 : i32, i32
  }
  func.func @transform_3(%arg0: i32) -> (i32, i32) {
    %c0_i32 = arith.constant 0 : i32
    %c0_i32_0 = arith.constant 0 : i32
    %c0_i32_1 = arith.constant 0 : i32
    return %c0_i32, %c0_i32_0 : i32, i32
  }
  func.func @transform_4(%arg0: i32) -> (i32, i32) {
    %c0_i32 = arith.constant 0 : i32
    %c0_i32_0 = arith.constant 0 : i32
    %c0_i32_1 = arith.constant 0 : i32
    return %c0_i32, %c0_i32_0 : i32, i32
  }
  func.func @transform_5(%arg0: i32) -> (i32, i32) {
    %c0_i32 = arith.constant 0 : i32
    %c0_i32_0 = arith.constant 0 : i32
    return %arg0, %c0_i32 : i32, i32
  }
}

</mosaic_0001>

<bundles_post_ra>
// kernel: tpu_custom_call.1
= control target key start
LH: loop header
LB: loop body
LE: loop exit
PB: predicated region body
PF: predicated region fallthrough
CT: control target
= control target key end

     0   :  { %10 = vsyncpa [#allocation3], 0  ;;  %s775_s0 = inlined_call_operand.vmem [shape: f32[8,320], index: 0, kind: input, shape index: {}]   ;;  %s776_s1 = inlined_call_operand.hbm [shape: bf16[320,128], index: 1, kind: input, shape index: {}]   ;;  %s777_s2 = inlined_call_operand.vmem [shape: f32[1,128], index: 2, kind: input, shape index: {}]   ;;  %s778_s3 = inlined_call_operand.vmem [shape: f32[128,10], index: 3, kind: input, shape index: {}]   ;;  %s779_s4 = inlined_call_operand.vmem [shape: f32[1,10], index: 4, kind: input, shape index: {}]   ;;  %s780_s5 = inlined_call_operand.hbm [shape: f32[8,10], index: 5, kind: output, shape index: {}]  }
   0x1   :  { %11 = vsyncpa [#allocation4], 0  ;;  %s646_s18 = smov [#allocation2]   ;;  %s598_s22 = scalar_lea.hbm %s776_s1, 2560 }
   0x2   :  { %s19_s19 = sshll.u32 %s646_s18, 4  ;;  %p599_p0 = scmp.ne.s32.totalorder %s776_s1, %s598_s22  ;;  %s20_s19 = int_to_ptr.vmem [resolvable:$true] %s19_s19 }
   0x3   :  { %p602_p1 = scmp.lt.u32.totalorder %s598_s22, %s776_s1 }
   0x5   :  { %p604_p2 = pnand %p602_p1, %p599_p0 }
   0x7   :  { %607 = shalt.err (!%p604_p2)
}
   0x8   :  { %s608_s27 = scalar_lea.vmem %s20_s19, 2560  ;;  %p613_p4 = scmp.lt.s32.totalorder %s20_s19, %s20_s19 }
   0x9   :  { %p609_p3 = scmp.ne.s32.totalorder %s20_s19, %s608_s27  ;;  %p614_p5 = scmp.lt.s32.totalorder %s608_s27, %s608_s27 }
   0xb   :  { %p615_p6 = por %p614_p5, %p613_p4 }
   0xd   :  { %p616_p7 = pnand %p615_p6, %p609_p3 }
   0xf   :  { %619 = shalt.err (!%p616_p7)
}
  0x10   :  { %s647_s28 = smov 64   ;;  %s648_s29 = smov 4  }
  0x11   :  { %25 = dma.hbm_to_vmem [thread:$0]  %s776_s1, 2560, %s20_s19, [#allocation3], %s647_s28, %s647_s28, %s648_s29  }
  0x12   :  { %642 = dma.done.wait [#allocation3], 2560  }
  0x13   :  { %643 = vsyncadd [#allocation3], 4294964736  ;;  %v649_v0 = vmov 0.0   ;;  %vm650_vm0 = vmmov 0   ;;  %v570_v1 = vld [vmem:[#allocation2 + $0x40] sm:$0xff]   ;;  %v572_v3 = vld [vmem:[#allocation2 + $0x48] sm:$0xff]  }
  0x14   :  { %492 = vmatprep.subr.bf16.mxu1 %v649_v0  ;;  %500 = vmatprep.mubr.msk.bf16.mxu1 %vm650_vm0, %v649_v0  ;;  %v571_v2 = vld [vmem:[#allocation2] sm:$0xff]   ;;  %v573_v4 = vld [vmem:[#allocation2 + $0x8] sm:$0xff]   ;;  %v574_v5 = vld [vmem:[#allocation2 + $0x50] sm:$0xff]   ;;  %vm209_vm1 = vcmask 523264   ;;  %v651_v42 = vmov 0.0|0.0   ;;  %vm396_vm2 = vcmask 80896  }
  0x15   :  { %448 = vmatprep.subr.bf16.mxu0 %v570_v1  ;;  %v575_v6 = vld [vmem:[#allocation2 + $0x10] sm:$0xff]   ;;  %v576_v7 = vld [vmem:[#allocation2 + $0x58] sm:$0xff]   ;;  %v580_v8 = vld [vmem:[#allocation2 + $0x80] sm:$0xff]  }
  0x16   :  { %449 = vmatpush3.bf16.msra.mxu0 %v571_v2  ;;  %v577_v9 = vld [vmem:[#allocation2 + $0x18] sm:$0xff]   ;;  %v578_v10 = vld [vmem:[#allocation2 + $0x60] sm:$0xff]   ;;  %493 = vmatpush3.bf16.msra.mxu1 %v580_v8  ;;  %v583_v11 = vld [vmem:[#allocation2 + $0x88] sm:$0xff]  }
  0x17   :  { %450 = vmatprep.subr.bf16.mxu0 %v572_v3  ;;  %494 = vmatprep.subr.bf16.mxu1 %v649_v0  ;;  %v579_v12 = vld [vmem:[#allocation2 + $0x20] sm:$0xff]   ;;  %v581_v13 = vld [vmem:[#allocation2 + $0x68] sm:$0xff]   ;;  %v586_v14 = vld [vmem:[#allocation2 + $0x90] sm:$0xff]  }
  0x18   :  { %v582_v15 = vld [vmem:[#allocation2 + $0x28] sm:$0xff]   ;;  %v584_v17 = vld [vmem:[#allocation2 + $0x70] sm:$0xff]   ;;  %v589_v19 = vld [vmem:[#allocation2 + $0x98] sm:$0xff]  }
  0x19   :  { %v37_v16 = vld [vmem:[%s775_s0 + $0x8] sm:$0xff]  ;;  %v38_v20 = vld [vmem:[%s775_s0 + $0x10] sm:$0xff]  ;;  %v587_v23 = vld [vmem:[#allocation2 + $0x78] sm:$0xff]  }
  0x1a   :  { %451 = vmatpush3.bf16.msra.mxu0 %v573_v4  ;;  %495 = vmatpush3.bf16.msra.mxu1 %v583_v11  ;;  %v40_v18 = vpack.c.bf16 %v37_v16, %v37_v16  ;;  %v585_v21 = vld [vmem:[#allocation2 + $0x30] sm:$0xff]   ;;  %v41_v22 = vpack.c.bf16 %v38_v20, %v38_v20  ;;  %v588_v24 = vld [vmem:[#allocation2 + $0x38] sm:$0xff]   ;;  %v36_v25 = vld [vmem:[%s775_s0] sm:$0xff] }
  0x1b   :  { %452 = vmatprep.subr.bf16.mxu0 %v574_v5  ;;  %496 = vmatprep.subr.bf16.mxu1 %v649_v0  ;;  %v39_v26 = vpack.c.bf16 %v36_v25, %v36_v25  ;;  %v425_v33 = vld [vmem:[%s777_s2] ss:$0 sm:$0xff]  ;;  %v304_v40 = vld [vmem:[%s778_s3 + $0x8] sm:$0xff]  ;;  %v305_v41 = vld [vmem:[%s778_s3 + $0x10] sm:$0xff] }
  0x1c   :  { %245 = vmatprep.mubr.bf16.mxu0 %v40_v18  ;;  %v303_v39 = vld [vmem:[%s778_s3] sm:$0xff]  ;;  %v306_v44 = vld [vmem:[%s778_s3 + $0x18] sm:$0xff]  ;;  %v308_v47 = vld [vmem:[%s778_s3 + $0x28] sm:$0xff] }
  0x1d   :  { %v540_v43 = vpack.c.bf16 %v304_v40, %v303_v39  ;;  %v543_v45 = vpack.c.bf16 %v306_v44, %v305_v41  ;;  %v307_v46 = vld [vmem:[%s778_s3 + $0x20] sm:$0xff]  ;;  %v309_v49 = vld [vmem:[%s778_s3 + $0x30] sm:$0xff]  ;;  %v310_v50 = vld [vmem:[%s778_s3 + $0x38] sm:$0xff] }
  0x1e   :  { %453 = vmatpush3.bf16.msra.mxu0 %v575_v6  ;;  %497 = vmatpush3.bf16.msra.mxu1 %v586_v14  ;;  %v546_v48 = vpack.c.bf16 %v308_v47, %v307_v46  ;;  %v549_v51 = vpack.c.bf16 %v310_v50, %v309_v49  ;;  %v311_v56 = vld [vmem:[%s778_s3 + $0x40] sm:$0xff]  ;;  %v312_v57 = vld [vmem:[%s778_s3 + $0x48] sm:$0xff]  ;;  %v313_v59 = vld [vmem:[%s778_s3 + $0x50] sm:$0xff] }
  0x1f   :  { %454 = vmatprep.subr.bf16.mxu0 %v576_v7  ;;  %498 = vmatprep.subr.bf16.mxu1 %v649_v0  ;;  %v552_v58 = vpack.c.bf16 %v312_v57, %v311_v56  ;;  %v314_v60 = vld [vmem:[%s778_s3 + $0x58] sm:$0xff]  ;;  %v315_v62 = vld [vmem:[%s778_s3 + $0x60] sm:$0xff]  ;;  %v316_v63 = vld [vmem:[%s778_s3 + $0x68] sm:$0xff] }
  0x20   :  { %v555_v61 = vpack.c.bf16 %v314_v60, %v313_v59  ;;  %v317_v1 = vld [vmem:[%s778_s3 + $0x70] sm:$0xff]  ;;  %v318_v2 = vld [vmem:[%s778_s3 + $0x78] sm:$0xff]  ;;  %v447_v8 = vld [vmem:[%s779_s4] ss:$0 sm:$0xff]  ;;  %s652_s3 = smov [#allocation5]  }
  0x21   :  { %v561_v3 = vpack.c.bf16 %v318_v2, %v317_v1  ;;  %s416_s4 = sshll.u32 %s652_s3, 4  ;;  %s417_s4 = int_to_ptr.vmem [resolvable:$true] %s416_s4 }
  0x22   :  { %455 = vmatpush3.bf16.msra.mxu0 %v577_v9  ;;  %499 = vmatpush3.bf16.msra.mxu1 %v589_v19  ;;  %s620_s2 = scalar_lea.vmem %s417_s4, 128  ;;  %p625_p9 = scmp.lt.s32.totalorder %s417_s4, %s417_s4 }
  0x23   :  { %456 = vmatprep.subr.bf16.mxu0 %v578_v10  ;;  %539 = vmatprep.subr.bf16.mxu1 %v651_v42  ;;  %p621_p8 = scmp.ne.s32.totalorder %s417_s4, %s620_s2  ;;  %p626_p10 = scmp.lt.s32.totalorder %s620_s2, %s620_s2 }
  0x25   :  { %501 = vmatmul.mubr.msk.bf16.vlgmr.msra.gmra.mrb[0].mxu1 %vm209_vm1, %v41_v22  ;;  %p627_p11 = por %p626_p10, %p625_p9 }
  0x26   :  { %457 = vmatpush3.bf16.msra.mxu0 %v579_v12  ;;  %536 = vmatprep.mubr.msk.f32.mxu1 %vm650_vm0, %v649_v0  ;;  %v558_v0 = vpack.c.bf16 %v316_v63, %v315_v62 }
  0x27   :  { %458 = vmatprep.subr.bf16.mxu0 %v581_v13  ;;  %541 = vmatpush3.bf16.msra.mxu1 %v540_v43  ;;  %p628_p12 = pnand %p627_p11, %p621_p8 }
  0x28   :  { %542 = vmatprep.subr.bf16.mxu1 %v651_v42 }
  0x2a   :  { %459 = vmatpush3.bf16.msra.mxu0 %v582_v15 }
  0x2b   :  { %460 = vmatprep.subr.bf16.mxu0 %v584_v17  ;;  %544 = vmatpush3.bf16.msra.mxu1 %v543_v45 }
  0x2c   :  { %545 = vmatprep.subr.bf16.mxu1 %v651_v42 }
  0x2e   :  { %461 = vmatpush3.bf16.msra.mxu0 %v585_v21 }
  0x2f   :  { %462 = vmatprep.subr.bf16.mxu0 %v587_v23  ;;  %547 = vmatpush3.bf16.msra.mxu1 %v546_v48 }
  0x30   :  { %548 = vmatprep.subr.bf16.mxu1 %v651_v42 }
  0x32   :  { %463 = vmatpush3.bf16.msra.mxu0 %v588_v24 }
  0x33   :  { %550 = vmatpush3.bf16.msra.mxu1 %v549_v51 }
  0x34   :  { %551 = vmatprep.subr.bf16.mxu1 %v651_v42 }
  0x35   :  { %246 = vmatmul.mubr.bf16.vlgmr.msra.gmra.mrb[0].mxu0 %v39_v26 }
  0x37   :  { %553 = vmatpush3.bf16.msra.mxu1 %v552_v58 }
  0x38   :  { %554 = vmatprep.subr.bf16.mxu1 %v651_v42 }
  0x3b   :  { %556 = vmatpush3.bf16.msra.mxu1 %v555_v61 }
  0x3c   :  { %557 = vmatprep.subr.bf16.mxu1 %v651_v42 }
  0x3f   :  { %559 = vmatpush3.bf16.msra.mxu1 %v558_v0 }
  0x40   :  { %560 = vmatprep.subr.bf16.mxu1 %v651_v42 }
  0x43   :  { %562 = vmatpush3.bf16.msra.mxu1 %v561_v3 }
  0xf8   :  { %v287_v27 = vpop.f32.mrb[0].mxu1 }
  0xf9   :  { %v502_v28 = vpop.f32.mrb[1].mxu1 }
  0xfa   :  { %v290_v29 = vpop.f32.mrb[2].mxu1 }
  0xfb   :  { %v503_v30 = vpop.f32.mrb[3].mxu1 }
 0x108   :  { %v464_v31 = vpop.f32.mrb[0].mxu0 }
 0x109   :  { %v465_v32 = vpop.f32.mrb[1].mxu0 }
 0x10a   :  { %v466_v34 = vadd.f32 %v465_v32, %v464_v31  ;;  %v467_v35 = vpop.f32.mrb[2].mxu0 }
 0x10b   :  { %v468_v36 = vpop.f32.mrb[3].mxu0 }
 0x10c   :  { %v248_v37 = vadd.f32 %v466_v34, %v425_v33 }
 0x10e   :  { %v288_v38 = vadd.f32 %v287_v27, %v248_v37 }
 0x110   :  { %293 = vmax.xlane.f32.xlu0 %v288_v38 }
 0x19d   :  { %v294_v52 = vpop.xlane.xlu0 %293 }
 0x19e   :  { %v295_v53 = vsub.f32 %v288_v38, %v294_v52 }
 0x1a0   :  { %v296_v54 = vmul.f32 1.442695, %v295_v53 }
 0x1a2   :  { %590 = vpow2.f32 %v296_v54 }
 0x1ac   :  { %v591_v55 = vpop.eup %590 }
 0x1ad   :  { %298 = vadd.xlane.f32.xlu0 %v591_v55 }
 0x23a   :  { %v299_v4 = vpop.xlane.xlu0 %298 }
 0x23b   :  { %592 = vlog2.f32 %v299_v4 }
 0x245   :  { %v593_v5 = vpop.eup %592 }
 0x246   :  { %v301_v6 = vmul.f32 0.6931472, %v593_v5 }
 0x248   :  { %v302_v7 = vsub.f32 %v295_v53, %v301_v6 }
 0x24a   :  { %537 = vmatmul.mubr.f32.vlgmr.msra.gmra.mrb[4].mxu1 %v302_v7 }
 0x31d   :  { %v392_v9 = vpop.f32.mrb[4].mxu1 }
 0x31e   :  { %v393_v10 = vadd.f32 %v447_v8, %v392_v9  ;;  %v538_v11 = vpop.f32.mrb[5].mxu1 }
 0x320   :  { %v397_v12 = vsel %vm396_vm2, %v393_v10, -inf }
 0x321   :  { %398 = vmax.xlane.f32.xlu1 %v397_v12 }
 0x3ae   :  { %v399_v13 = vpop.xlane.xlu1 %398 }
 0x3af   :  { %v400_v14 = vsub.f32 %v393_v10, %v399_v13 }
 0x3b1   :  { %v401_v15 = vmul.f32 1.442695, %v400_v14 }
 0x3b3   :  { %594 = vpow2.f32 %v401_v15 }
 0x3bd   :  { %v595_v16 = vpop.eup %594 }
 0x3be   :  { %v403_v17 = vsel %vm396_vm2, %v595_v16, 0.0 }
 0x3bf   :  { %404 = vadd.xlane.f32.xlu1 %v403_v17 }
 0x44c   :  { %v405_v18 = vpop.xlane.xlu1 %404 }
 0x44d   :  { %596 = vlog2.f32 %v405_v18 }
 0x457   :  { %v597_v19 = vpop.eup %596 }
 0x458   :  { %v407_v20 = vmul.f32 0.6931472, %v597_v19 }
 0x45a   :  { %v408_v21 = vsub.f32 %v400_v14, %v407_v20 }
 0x45c   :  { %409 = vst.msk [vmem:[#allocation5] sm:$0xff] %vm396_vm2, %v408_v21 }
 0x45d   :  { %631 = shalt.err (!%p628_p12)
}
 0x45e   :  { %s632_s21 = scalar_lea.hbm %s780_s5, 128 }
 0x45f   :  { %p633_p13 = scmp.ne.s32.totalorder %s780_s5, %s632_s21  ;;  %p636_p0 = scmp.lt.u32.totalorder %s632_s21, %s780_s5 }
 0x461   :  { %p638_p1 = pnand %p636_p0, %p633_p13 }
 0x463   :  { %641 = shalt.err (!%p638_p1)
}
 0x464   :  { %419 = dma.vmem_to_hbm [thread:$0]  %s417_s4, 128, %s780_s5, [#allocation4]  }
 0x465   :  { %644 = dma.done.wait [#allocation4], 128  }
 0x466   :  { %645 = vsyncadd [#allocation4], 4294967168 }
 0x467   :  { %423 = vsyncpa [#allocation3], 1 }
 0x468   :  { %424 = vsyncpa [#allocation4], 1 }

</bundles_post_ra>
